<compile_context>
chip_gen: v6e
topology: v6e:2x2x1
jax: 0.10.0
libtpu: 0.0.40
codegen_flags: <defaults>
</compile_context>

<pallas_src>
import functools

import jax
import jax.numpy as jnp
from jax.experimental import pallas as pl
from jax.experimental.pallas import tpu as pltpu


def _dsconv_kernel(x_ref, m_ref, bias_ref, o_ref, *, kh, stride, out_h):
    # x_ref   : (1, Hp, WpC_pad)       one padded image, (W, Cin) flat on lanes
    # m_ref   : (kh, WpC_pad, OWC)     per-row-tap fused depthwise*pointwise mats
    # bias_ref: (1, OWC)               pw bias + folded dw bias, lane-tiled
    # o_ref   : (out_h, OWC)           lane-dense per-image output slab
    x = x_ref[0]                                     # (Hp, WpC_pad)
    owc = o_ref.shape[-1]

    acc = jnp.zeros((out_h, owc), jnp.float32)
    for i in range(kh):                              # kh MXU matmuls, accumulated
        if stride == 1:
            rows = x[i:i + out_h, :]
        else:
            rows = x[i:i + stride * (out_h - 1) + 1:stride, :]
        acc = acc + jnp.dot(rows, m_ref[i], preferred_element_type=jnp.float32)

    o_ref[...] = (acc + bias_ref[...]).astype(o_ref.dtype)


def prepare_dsconv(dw_w, dw_b, pw_w, pw_b, *, H, W, stride=1, padding=0):
    """One-time weight preprocessing (hoisted out of the per-call path).

    dw_w: (Cin,1,kh,kw); dw_b: (Cin,); pw_w: (Cout,Cin,1,1); pw_b: (Cout,)."""
    Cin = dw_w.shape[0]
    kh, kw = dw_w.shape[2], dw_w.shape[3]
    Cout = pw_w.shape[0]
    out_h = (H + 2 * padding - kh) // stride + 1
    out_w = (W + 2 * padding - kw) // stride + 1
    Hp, Wp = H + 2 * padding, W + 2 * padding
    WpC = Wp * Cin
    WpC_pad = ((WpC + 127) // 128) * 128             # lane-dense / vreg aligned
    OWC = out_w * Cout

    dw = dw_w[:, 0, :, :].astype(jnp.float32)                        # (Cin,kh,kw)
    pw = jnp.transpose(pw_w[:, :, 0, 0], (1, 0)).astype(jnp.float32)  # (Cin,Cout)

    # sel[w, ow, j] = 1 iff w == ow*stride + j  (kw lane shifts + W stride select)
    sel = (jnp.arange(Wp)[:, None, None]
           == (stride * jnp.arange(out_w)[None, :, None]
               + jnp.arange(kw)[None, None, :])).astype(jnp.float32)  # (Wp,out_w,kw)

    # M[i, w*Cin+c, ow*Cout+co] = dw[c, i, w-ow*stride] * pw[c, co]
    m = jnp.einsum('wvj,cij,co->iwcvo', sel, dw, pw).reshape(kh, WpC, OWC)
    m = jnp.pad(m, ((0, 0), (0, WpC_pad - WpC), (0, 0)))   # padded rows stay 0

    # Depthwise bias folded through the pointwise weights; lane-tiled over out_w.
    bias = pw_b.astype(jnp.float32) + dw_b.astype(jnp.float32) @ pw   # (Cout,)
    bias_tiled = jnp.tile(bias, out_w).reshape(1, OWC)

    geom = dict(Cin=Cin, Cout=Cout, kh=kh, kw=kw, stride=stride, padding=padding,
                H=H, W=W, Hp=Hp, Wp=Wp, out_h=out_h, out_w=out_w,
                WpC=WpC, WpC_pad=WpC_pad, OWC=OWC)
    return m, bias_tiled, geom


def depthwise_separable_conv(x_nchw, m, bias_tiled, geom):
    """x_nchw: (N, Cin, H, W) -> (N, Cout, out_h, out_w)."""
    g = geom
    N = x_nchw.shape[0]

    # --- Input layout (per-call): NCHW -> NHWC, spatial zero pad, flatten
    #     (W, Cin) onto lanes, zero-pad lanes to a multiple of 128.
    x = jnp.transpose(x_nchw, (0, 2, 3, 1)).astype(jnp.float32)
    x = jnp.pad(x, ((0, 0), (g['padding'], g['padding']),
                    (g['padding'], g['padding']), (0, 0)))
    x = x.reshape(N, g['Hp'], g['WpC'])
    x = jnp.pad(x, ((0, 0), (0, 0), (0, g['WpC_pad'] - g['WpC'])))

    kernel = functools.partial(_dsconv_kernel, kh=g['kh'], stride=g['stride'],
                               out_h=g['out_h'])

    out2d = pl.pallas_call(
        kernel,
        out_shape=jax.ShapeDtypeStruct((N * g['out_h'], g['OWC']), jnp.float32),
        grid_spec=pltpu.PrefetchScalarGridSpec(
            num_scalar_prefetch=0,
            grid=(N,),                                  # one image per step
            in_specs=[
                pl.BlockSpec((1, g['Hp'], g['WpC_pad']), lambda n: (n, 0, 0)),
                # Grid-invariant weights: constant index_map -> fetched once.
                pl.BlockSpec((g['kh'], g['WpC_pad'], g['OWC']),
                             lambda n: (0, 0, 0)),
                pl.BlockSpec((1, g['OWC']), lambda n: (0, 0)),
            ],
            out_specs=pl.BlockSpec((g['out_h'], g['OWC']), lambda n: (n, 0)),
        ),
        compiler_params=pltpu.CompilerParams(
            dimension_semantics=("parallel",)),          # 2 TCs on v7x
    )(x, m, bias_tiled)

    out = out2d.reshape(N, g['out_h'], g['out_w'], g['Cout']).astype(x_nchw.dtype)
    return jnp.transpose(out, (0, 3, 1, 2))


def _reference(x, dw_w, dw_b, pw_w, pw_b, *, stride, padding):
    cin = x.shape[1]
    y = jax.lax.conv_general_dilated(
        x, dw_w, (stride, stride), [(padding, padding), (padding, padding)],
        dimension_numbers=("NCHW", "OIHW", "NCHW"),
        feature_group_count=cin) + dw_b[None, :, None, None]
    y = jax.lax.conv_general_dilated(
        y, pw_w, (1, 1), "VALID",
        dimension_numbers=("NCHW", "OIHW", "NCHW")) + pw_b[None, :, None, None]
    return y


if __name__ == "__main__":
    # Module config: DepthwiseSeparableConv(in_channels=4, out_channels=8,
    #                                       kernel_size=3, stride=1, padding=1)
    in_channels, out_channels, kernel_size, stride, padding = 4, 8, 3, 1, 1
    N, H, W = 2, 16, 16

    key = jax.random.PRNGKey(0)
    kx, k1, k2, k3, k4 = jax.random.split(key, 5)

    x = jax.random.normal(kx, (N, in_channels, H, W), jnp.float32)
    dw_weight = jax.random.normal(k1, (in_channels, 1, kernel_size, kernel_size),
                                  jnp.float32) * 0.2
    dw_bias = jax.random.normal(k2, (in_channels,), jnp.float32) * 0.1
    pw_weight = jax.random.normal(k3, (out_channels, in_channels, 1, 1),
                                  jnp.float32) * 0.2
    pw_bias = jax.random.normal(k4, (out_channels,), jnp.float32) * 0.1

    # Weight prep once per weight set (hoisted out of the forward path).
    m, bias_tiled, geom = prepare_dsconv(dw_weight, dw_bias, pw_weight, pw_bias,
                                         H=H, W=W, stride=stride, padding=padding)

    fwd = jax.jit(lambda xx: depthwise_separable_conv(xx, m, bias_tiled, geom))

    out = jax.block_until_ready(fwd(x))

    ref = _reference(x, dw_weight, dw_bias, pw_weight, pw_bias,
                     stride=stride, padding=padding)
    assert out.shape == ref.shape, (out.shape, ref.shape)
    assert jnp.allclose(out, ref, atol=1e-5, rtol=1e-5), (
        float(jnp.max(jnp.abs(out - ref))))

    print("KERNEL_OK")
</pallas_src>

<mosaic_0001>
module attributes {stable_mosaic.version = 11 : i64} {
  func.func @_dsconv_kernel(%arg0: i32, %arg1: memref<1x18x128xf32, #tpu.memory_space<vmem>>, %arg2: memref<3x128x128xf32, #tpu.memory_space<vmem>>, %arg3: memref<1x128xf32, #tpu.memory_space<vmem>>, %arg4: memref<16x128xf32, #tpu.memory_space<vmem>>) attributes {dimension_semantics = [#tpu.dimension_semantics<parallel>], iteration_bounds = array<i64: 2>, scalar_prefetch = 0 : i64, scratch_operands = 0 : i64, tpu.core_type = #tpu.core_type<tc>, window_params = [{transform_indices = @transform_0, window_bounds = array<i64: 1, 18, 128>}, {pipeline_mode = #tpu.pipeline_mode<synchronous>, transform_indices = @transform_1, window_bounds = array<i64: 3, 128, 128>}, {pipeline_mode = #tpu.pipeline_mode<synchronous>, transform_indices = @transform_2, window_bounds = array<i64: 1, 128>}, {transform_indices = @transform_3, window_bounds = array<i64: 16, 128>}]} {
    %c0 = arith.constant 0 : index
    %c0_0 = arith.constant 0 : index
    %c0_1 = arith.constant 0 : index
    %0 = vector.load %arg1[%c0, %c0_0, %c0_1] : memref<1x18x128xf32, #tpu.memory_space<vmem>>, vector<1x18x128xf32>
    %1 = vector.shape_cast %0 : vector<1x18x128xf32> to vector<18x128xf32>
    %cst = arith.constant 0.000000e+00 : f32
    %2 = vector.broadcast %cst : f32 to vector<16x128xf32>
    %3 = vector.extract_strided_slice %1 {offsets = [0, 0], sizes = [16, 128], strides = [1, 1]} : vector<18x128xf32> to vector<16x128xf32>
    %c0_2 = arith.constant 0 : index
    %c0_3 = arith.constant 0 : index
    %c0_4 = arith.constant 0 : index
    %4 = vector.load %arg2[%c0_2, %c0_3, %c0_4] : memref<3x128x128xf32, #tpu.memory_space<vmem>>, vector<1x128x128xf32>
    %5 = vector.shape_cast %4 : vector<1x128x128xf32> to vector<128x128xf32>
    %cst_5 = arith.constant dense<0.000000e+00> : vector<16x128xf32>
    %6 = tpu.matmul %3, %5, %cst_5 {dimension_numbers = #tpu.dot_dimension_numbers<[1], [0], [0], [1], [0, 0, 1, 1], [], []>} : vector<16x128xf32>, vector<128x128xf32>, vector<16x128xf32> -> vector<16x128xf32>
    %7 = arith.addf %2, %6 : vector<16x128xf32>
    %8 = vector.extract_strided_slice %1 {offsets = [1, 0], sizes = [16, 128], strides = [1, 1]} : vector<18x128xf32> to vector<16x128xf32>
    %c1 = arith.constant 1 : index
    %c0_6 = arith.constant 0 : index
    %c0_7 = arith.constant 0 : index
    %9 = vector.load %arg2[%c1, %c0_6, %c0_7] : memref<3x128x128xf32, #tpu.memory_space<vmem>>, vector<1x128x128xf32>
    %10 = vector.shape_cast %9 : vector<1x128x128xf32> to vector<128x128xf32>
    %cst_8 = arith.constant dense<0.000000e+00> : vector<16x128xf32>
    %11 = tpu.matmul %8, %10, %cst_8 {dimension_numbers = #tpu.dot_dimension_numbers<[1], [0], [0], [1], [0, 0, 1, 1], [], []>} : vector<16x128xf32>, vector<128x128xf32>, vector<16x128xf32> -> vector<16x128xf32>
    %12 = arith.addf %7, %11 : vector<16x128xf32>
    %13 = vector.extract_strided_slice %1 {offsets = [2, 0], sizes = [16, 128], strides = [1, 1]} : vector<18x128xf32> to vector<16x128xf32>
    %c2 = arith.constant 2 : index
    %c0_9 = arith.constant 0 : index
    %c0_10 = arith.constant 0 : index
    %14 = vector.load %arg2[%c2, %c0_9, %c0_10] : memref<3x128x128xf32, #tpu.memory_space<vmem>>, vector<1x128x128xf32>
    %15 = vector.shape_cast %14 : vector<1x128x128xf32> to vector<128x128xf32>
    %cst_11 = arith.constant dense<0.000000e+00> : vector<16x128xf32>
    %16 = tpu.matmul %13, %15, %cst_11 {dimension_numbers = #tpu.dot_dimension_numbers<[1], [0], [0], [1], [0, 0, 1, 1], [], []>} : vector<16x128xf32>, vector<128x128xf32>, vector<16x128xf32> -> vector<16x128xf32>
    %17 = arith.addf %12, %16 : vector<16x128xf32>
    %c0_12 = arith.constant 0 : index
    %c0_13 = arith.constant 0 : index
    %18 = vector.load %arg3[%c0_12, %c0_13] : memref<1x128xf32, #tpu.memory_space<vmem>>, vector<1x128xf32>
    %19 = vector.broadcast %18 : vector<1x128xf32> to vector<16x128xf32>
    %20 = arith.addf %17, %19 : vector<16x128xf32>
    %c0_14 = arith.constant 0 : index
    %c0_15 = arith.constant 0 : index
    %21 = vector.load %arg4[%c0_14, %c0_15] : memref<16x128xf32, #tpu.memory_space<vmem>>, vector<16x128xf32>
    tpu.vector_store %arg4[%c0_14, %c0_15], %20 {strides = array<i32>} : memref<16x128xf32, #tpu.memory_space<vmem>>, vector<16x128xf32>,
    return
  }
  func.func @transform_0(%arg0: i32) -> (i32, i32, i32) {
    %c0_i32 = arith.constant 0 : i32
    %c0_i32_0 = arith.constant 0 : i32
    %c0_i32_1 = arith.constant 0 : i32
    return %arg0, %c0_i32, %c0_i32_0 : i32, i32, i32
  }
  func.func @transform_1(%arg0: i32) -> (i32, i32, i32) {
    %c0_i32 = arith.constant 0 : i32
    %c0_i32_0 = arith.constant 0 : i32
    %c0_i32_1 = arith.constant 0 : i32
    %c0_i32_2 = arith.constant 0 : i32
    return %c0_i32, %c0_i32_0, %c0_i32_1 : i32, i32, i32
  }
  func.func @transform_2(%arg0: i32) -> (i32, i32) {
    %c0_i32 = arith.constant 0 : i32
    %c0_i32_0 = arith.constant 0 : i32
    %c0_i32_1 = arith.constant 0 : i32
    return %c0_i32, %c0_i32_0 : i32, i32
  }
  func.func @transform_3(%arg0: i32) -> (i32, i32) {
    %c0_i32 = arith.constant 0 : i32
    %c0_i32_0 = arith.constant 0 : i32
    return %arg0, %c0_i32 : i32, i32
  }
}

</mosaic_0001>

<bundles_post_ra>
// kernel: _lambda_.1
= control target key start
LH: loop header
LB: loop body
LE: loop exit
PB: predicated region body
PF: predicated region fallthrough
CT: control target
= control target key end

     0   :  { %s777_s12 = smov 0   ;;  %s963_s0 = inlined_call_operand.vmem [shape: f32[2,18,128], index: 0, kind: input, shape index: {}]   ;;  %s964_s1 = inlined_call_operand.vmem [shape: f32[3,128,128], index: 1, kind: input, shape index: {}]   ;;  %s965_s2 = inlined_call_operand.vmem [shape: f32[1,128], index: 2, kind: input, shape index: {}]   ;;  %s966_s3 = inlined_call_operand.vmem [shape: f32[32,128], index: 3, kind: output, shape index: {}]  }
   0x1 LB: > { %s783_s13 = sadd.s32 4294967295, %s755_s12   ;;  %p542_p0 = scmp.ge.s32.totalorder %s755_s12, 1  ;;  %s755_s12 = sphi %s777_s12, %s13_s12  }
   0x2   : > { %p137_p1 = scmp.lt.s32.totalorder %s755_s12, 3 }
   0x4   : > { %p138_p2 = pnand %p542_p0, %p137_p1 }
   0x5   : > { %p161_p3 = scmp.lt.s32.totalorder (!%p138_p2), %s783_s13, 1  ;;  %s544_s15 = sshll.u32 (!%p138_p2), %s783_s13, 1 }
   0x6   : > { %141 = sbr.rel (%p138_p2) target bundleno = 278 (0x116), region = 32  ;;  %p167_p4 = scmp.lt.s32.totalorder (!%p138_p2), %s544_s15, 3 }
   0xb   : > { %v561_v0 = vld [vmem:[%s964_s1 + $0xf8] sm:$0xff]  ;;  %v560_v2 = vld [vmem:[%s964_s1 + $0xf0] sm:$0xff]  ;;  %v559_v4 = vld [vmem:[%s964_s1 + $0xe8] sm:$0xff]  ;;  %s162_s17 = scalar_select %p161_p3, %s783_s13, 1  ;;  %vm211_vm0 = vcmask 1046528   ;;  %vm386_vm1 = vcmask 1045504  }
   0xc   : > { %v190_v1 = vld [vmem:[%s964_s1 + $0x78] sm:$0xff]  ;;  %635 = vmatprep.subr.mxu0 %v561_v0  ;;  %v189_v3 = vld [vmem:[%s964_s1 + $0x70] sm:$0xff]  ;;  %v188_v5 = vld [vmem:[%s964_s1 + $0x68] sm:$0xff]  ;;  %s968_s15 = smov (!%p167_p4, %s544_s15), 3 }
   0xd   : > { %670 = vmatprep.subr.mxu1 %v190_v1  ;;  %636 = vmatpush3.msra.mxu0 %v561_v0  ;;  %v558_v6 = vld [vmem:[%s964_s1 + $0xe0] sm:$0xff]  ;;  %v557_v8 = vld [vmem:[%s964_s1 + $0xd8] sm:$0xff]  ;;  %v556_v10 = vld [vmem:[%s964_s1 + $0xd0] sm:$0xff]  ;;  %s740_s26 = smul.u32 24, %s162_s17  ;;  %s545_s16 = sshll.u32 %s968_s15, 3 }
   0xe   : > { %671 = vmatpush3.msra.mxu1 %v190_v1  ;;  %637 = vmatprep.subr.mxu0 %v560_v2  ;;  %v187_v7 = vld [vmem:[%s964_s1 + $0x60] sm:$0xff]  ;;  %v186_v9 = vld [vmem:[%s964_s1 + $0x58] sm:$0xff]  ;;  %v185_v11 = vld [vmem:[%s964_s1 + $0x50] sm:$0xff]  ;;  %s170_s13 = scalar_lea.vmem %s966_s3, %s545_s16 }
   0xf   : > { %672 = vmatprep.subr.mxu1 %v189_v3  ;;  %638 = vmatpush3.msra.mxu0 %v560_v2  ;;  %v555_v12 = vld [vmem:[%s964_s1 + $0xc8] sm:$0xff]  ;;  %v554_v14 = vld [vmem:[%s964_s1 + $0xc0] sm:$0xff]  ;;  %v553_v16 = vld [vmem:[%s964_s1 + $0xb8] sm:$0xff]  ;;  %s165_s10 = scalar_lea.vmem %s963_s0, %s740_s26 }
  0x10   : > { %673 = vmatpush3.msra.mxu1 %v189_v3  ;;  %639 = vmatprep.subr.mxu0 %v559_v4  ;;  %v184_v13 = vld [vmem:[%s964_s1 + $0x48] sm:$0xff]  ;;  %v183_v15 = vld [vmem:[%s964_s1 + $0x40] sm:$0xff]  ;;  %v182_v17 = vld [vmem:[%s964_s1 + $0x38] sm:$0xff] }
  0x11   : > { %674 = vmatprep.subr.mxu1 %v188_v5  ;;  %640 = vmatpush3.msra.mxu0 %v559_v4  ;;  %v552_v18 = vld [vmem:[%s964_s1 + $0xb0] sm:$0xff]  ;;  %v551_v20 = vld [vmem:[%s964_s1 + $0xa8] sm:$0xff]  ;;  %v550_v22 = vld [vmem:[%s964_s1 + $0xa0] sm:$0xff] }
  0x12   : > { %675 = vmatpush3.msra.mxu1 %v188_v5  ;;  %641 = vmatprep.subr.mxu0 %v558_v6  ;;  %v181_v19 = vld [vmem:[%s964_s1 + $0x30] sm:$0xff]  ;;  %v180_v21 = vld [vmem:[%s964_s1 + $0x28] sm:$0xff]  ;;  %v179_v23 = vld [vmem:[%s964_s1 + $0x20] sm:$0xff] }
  0x13   : > { %676 = vmatprep.subr.mxu1 %v187_v7  ;;  %642 = vmatpush3.msra.mxu0 %v558_v6  ;;  %v549_v24 = vld [vmem:[%s964_s1 + $0x98] sm:$0xff]  ;;  %v172_v26 = vld [vmem:[%s165_s10] sm:$0xff]  ;;  %v870_v27 = vld [vmem:[%s165_s10 + $0x8] sm:$0xff] }
  0x14   : > { %677 = vmatpush3.msra.mxu1 %v187_v7  ;;  %643 = vmatprep.subr.mxu0 %v557_v8  ;;  %v178_v25 = vld [vmem:[%s964_s1 + $0x18] sm:$0xff]  ;;  %v548_v28 = vld [vmem:[%s964_s1 + $0x90] sm:$0xff]  ;;  %v212_v31 = vrot.slane %v172_v26, 1  ;;  %v213_v32 = vrot.slane %v870_v27, 1  ;;  %v547_v33 = vld [vmem:[%s964_s1 + $0x88] sm:$0xff]  ;;  %v387_v38 = vrot.slane %v172_v26, 2 }
  0x15   : > { %678 = vmatprep.subr.mxu1 %v186_v9  ;;  %644 = vmatpush3.msra.mxu0 %v557_v8  ;;  %v177_v29 = vld [vmem:[%s964_s1 + $0x10] sm:$0xff]  ;;  %v176_v34 = vld [vmem:[%s964_s1 + $0x8] sm:$0xff]  ;;  %v546_v36 = vld [vmem:[%s964_s1 + $0x80] sm:$0xff]  ;;  %v388_v39 = vrot.slane %v870_v27, 2 }
  0x16   : > { %679 = vmatpush3.msra.mxu1 %v186_v9  ;;  %645 = vmatprep.subr.mxu0 %v556_v10  ;;  %v878_v30 = vld [vmem:[%s165_s10 + $0x10] sm:$0x3]  ;;  %v175_v37 = vld [vmem:[%s964_s1] sm:$0xff]  ;;  %v214_v40 = vsel %vm211_vm0, %v212_v31, %v213_v32  ;;  %v577_v42 = vld [vmem:[%s964_s1 + $0x178] sm:$0xff] }
  0x17   : > { %680 = vmatprep.subr.mxu1 %v185_v11  ;;  %646 = vmatpush3.msra.mxu0 %v556_v10  ;;  %v215_v35 = vrot.slane %v878_v30, 1  ;;  %v389_v43 = vsel %vm386_vm1, %v387_v38, %v388_v39  ;;  %v576_v44 = vld [vmem:[%s964_s1 + $0x170] sm:$0xff]  ;;  %v575_v45 = vld [vmem:[%s964_s1 + $0x168] sm:$0xff]  ;;  %v574_v46 = vld [vmem:[%s964_s1 + $0x160] sm:$0xff]  ;;  %v390_v58 = vrot.slane %v878_v30, 2 }
  0x18   : > { %681 = vmatpush3.msra.mxu1 %v185_v11  ;;  %647 = vmatprep.subr.mxu0 %v555_v12  ;;  %v573_v47 = vld [vmem:[%s964_s1 + $0x158] sm:$0xff]  ;;  %v572_v48 = vld [vmem:[%s964_s1 + $0x150] sm:$0xff]  ;;  %v571_v49 = vld [vmem:[%s964_s1 + $0x148] sm:$0xff] }
  0x19   : > { %682 = vmatprep.subr.mxu1 %v184_v13  ;;  %648 = vmatpush3.msra.mxu0 %v555_v12  ;;  %v216_v41 = vsel %vm211_vm0, %v213_v32, %v215_v35  ;;  %v570_v50 = vld [vmem:[%s964_s1 + $0x140] sm:$0xff]  ;;  %v569_v51 = vld [vmem:[%s964_s1 + $0x138] sm:$0xff]  ;;  %v568_v52 = vld [vmem:[%s964_s1 + $0x130] sm:$0xff]  ;;  %v391_v60 = vsel %vm386_vm1, %v388_v39, %v390_v58 }
  0x1a   : > { %683 = vmatpush3.msra.mxu1 %v184_v13  ;;  %649 = vmatprep.subr.mxu0 %v554_v14  ;;  %v567_v53 = vld [vmem:[%s964_s1 + $0x128] sm:$0xff]  ;;  %v566_v54 = vld [vmem:[%s964_s1 + $0x120] sm:$0xff]  ;;  %v565_v55 = vld [vmem:[%s964_s1 + $0x118] sm:$0xff] }
  0x1b   : > { %684 = vmatprep.subr.mxu1 %v183_v15  ;;  %650 = vmatpush3.msra.mxu0 %v554_v14  ;;  %v564_v56 = vld [vmem:[%s964_s1 + $0x110] sm:$0xff]  ;;  %v563_v57 = vld [vmem:[%s964_s1 + $0x108] sm:$0xff]  ;;  %v562_v59 = vld [vmem:[%s964_s1 + $0x100] sm:$0xff] }
  0x1c   : > { %685 = vmatpush3.msra.mxu1 %v183_v15  ;;  %651 = vmatprep.subr.mxu0 %v553_v16  ;;  %v578_v6 = vld [vmem:[%s965_s2] ss:$0 sm:$0xff] }
  0x1d   : > { %686 = vmatprep.subr.mxu1 %v182_v17  ;;  %652 = vmatpush3.msra.mxu0 %v553_v16 }
  0x1e   : > { %687 = vmatpush3.msra.mxu1 %v182_v17  ;;  %653 = vmatprep.subr.mxu0 %v552_v18 }
  0x1f   : > { %688 = vmatprep.subr.mxu1 %v181_v19  ;;  %654 = vmatpush3.msra.mxu0 %v552_v18 }
  0x20   : > { %689 = vmatpush3.msra.mxu1 %v181_v19  ;;  %655 = vmatprep.subr.mxu0 %v551_v20 }
  0x21   : > { %690 = vmatprep.subr.mxu1 %v180_v21  ;;  %656 = vmatpush3.msra.mxu0 %v551_v20 }
  0x22   : > { %691 = vmatpush3.msra.mxu1 %v180_v21  ;;  %657 = vmatprep.subr.mxu0 %v550_v22 }
  0x23   : > { %692 = vmatprep.subr.mxu1 %v179_v23  ;;  %658 = vmatpush3.msra.mxu0 %v550_v22 }
  0x24   : > { %693 = vmatpush3.msra.mxu1 %v179_v23  ;;  %659 = vmatprep.subr.mxu0 %v549_v24 }
  0x25   : > { %694 = vmatprep.subr.mxu1 %v178_v25  ;;  %660 = vmatpush3.msra.mxu0 %v549_v24 }
  0x26   : > { %695 = vmatpush3.msra.mxu1 %v178_v25  ;;  %661 = vmatprep.subr.mxu0 %v548_v28 }
  0x27   : > { %696 = vmatprep.subr.mxu1 %v177_v29  ;;  %662 = vmatpush3.msra.mxu0 %v548_v28 }
  0x28   : > { %697 = vmatpush3.msra.mxu1 %v177_v29  ;;  %663 = vmatprep.subr.mxu0 %v547_v33 }
  0x29   : > { %698 = vmatprep.subr.mxu1 %v176_v34  ;;  %664 = vmatpush3.msra.mxu0 %v547_v33 }
  0x2a   : > { %699 = vmatpush3.msra.mxu1 %v176_v34  ;;  %665 = vmatprep.subr.mxu0 %v546_v36 }
  0x2b   : > { %700 = vmatprep.subr.mxu1 %v175_v37  ;;  %666 = vmatpush3.msra.mxu0 %v546_v36 }
  0x2c   : > { %667 = vmatprep.mubr.f32.mxu0 %v214_v40  ;;  %701 = vmatpush3.msra.mxu1 %v175_v37 }
  0x2d   : > { %702 = vmatprep.mubr.f32.mxu1 %v172_v26  ;;  %668 = vmatmul.mubr.f32.vlgmr.msra.gmra.mxu0 %v216_v41 }
  0x2e   : > { %703 = vmatmul.mubr.f32.vlgmr.msra.gmra.mxu1 %v870_v27  ;;  %705 = vmatprep.subr.mxu0 %v577_v42 }
  0x2f   : > { %737 = vmatprep.mubr.f32.mxu0 %v389_v43  ;;  %706 = vmatpush3.msra.mxu0 %v577_v42 }
  0x30   : > { %707 = vmatprep.subr.mxu0 %v576_v44 }
  0x31   : > { %708 = vmatpush3.msra.mxu0 %v576_v44 }
  0x32   : > { %709 = vmatprep.subr.mxu0 %v575_v45 }
  0x33   : > { %710 = vmatpush3.msra.mxu0 %v575_v45 }
  0x34   : > { %711 = vmatprep.subr.mxu0 %v574_v46 }
  0x35   : > { %712 = vmatpush3.msra.mxu0 %v574_v46 }
  0x36   : > { %713 = vmatprep.subr.mxu0 %v573_v47 }
  0x37   : > { %714 = vmatpush3.msra.mxu0 %v573_v47 }
  0x38   : > { %715 = vmatprep.subr.mxu0 %v572_v48 }
  0x39   : > { %716 = vmatpush3.msra.mxu0 %v572_v48 }
  0x3a   : > { %717 = vmatprep.subr.mxu0 %v571_v49 }
  0x3b   : > { %718 = vmatpush3.msra.mxu0 %v571_v49 }
  0x3c   : > { %719 = vmatprep.subr.mxu0 %v570_v50 }
  0x3d   : > { %720 = vmatpush3.msra.mxu0 %v570_v50 }
  0x3e   : > { %721 = vmatprep.subr.mxu0 %v569_v51 }
  0x3f   : > { %722 = vmatpush3.msra.mxu0 %v569_v51 }
  0x40   : > { %723 = vmatprep.subr.mxu0 %v568_v52 }
  0x41   : > { %724 = vmatpush3.msra.mxu0 %v568_v52 }
  0x42   : > { %725 = vmatprep.subr.mxu0 %v567_v53 }
  0x43   : > { %726 = vmatpush3.msra.mxu0 %v567_v53 }
  0x44   : > { %727 = vmatprep.subr.mxu0 %v566_v54 }
  0x45   : > { %728 = vmatpush3.msra.mxu0 %v566_v54 }
  0x46   : > { %729 = vmatprep.subr.mxu0 %v565_v55 }
  0x47   : > { %730 = vmatpush3.msra.mxu0 %v565_v55 }
  0x48   : > { %731 = vmatprep.subr.mxu0 %v564_v56 }
  0x49   : > { %732 = vmatpush3.msra.mxu0 %v564_v56 }
  0x4a   : > { %733 = vmatprep.subr.mxu0 %v563_v57 }
  0x4b   : > { %734 = vmatpush3.msra.mxu0 %v563_v57 }
  0x4c   : > { %735 = vmatprep.subr.mxu0 %v562_v59 }
  0x4d   : > { %736 = vmatpush3.msra.mxu0 %v562_v59 }
  0x4e   : > { %738 = vmatmul.mubr.f32.vlgmr.msra.gmra.mxu0 %v391_v60 }
  0xed   : > { %v669_v61 = vpop.f32.mrf.mxu0 }
  0xee   : > { %v704_v62 = vpop.f32.mrf.mxu1 }
  0xef   : > { %v285_v63 = vpop.f32.mrf.mxu0  ;;  %v366_v1 = vadd.f32 %v704_v62, %v669_v61 }
  0xf0   : > { %v360_v0 = vpop.f32.mrf.mxu1 }
  0xf1   : > { %v361_v3 = vadd.f32 %v360_v0, %v285_v63 }
 0x10e   : > { %v739_v2 = vpop.f32.mrf.mxu0 }
 0x10f   : > { %v470_v4 = vadd.f32 %v739_v2, %v366_v1 }
 0x110   : > { %v460_v5 = vpop.f32.mrf.mxu0 }
 0x111   : > { %v469_v7 = vadd.f32 %v460_v5, %v361_v3  ;;  %v479_v9 = vadd.f32 %v578_v6, %v470_v4 }
 0x113   : > { %v478_v8 = vadd.f32 %v578_v6, %v469_v7  ;;  %481 = vst [vmem:[%s170_s13 + $0x8] sm:$0xff] %v479_v9 }
 0x115   : > { %480 = vst [vmem:[%s170_s13] sm:$0xff] %v478_v8 }
 0x116 PF: > { %s13_s12 = sadd.s32 1, %s755_s12  }
 0x117   : > { %p10_p5 = scmp.ge.s32.totalorder %s13_s12, 4  }
 0x119   :  { %12 = sbr.rel (!%p10_p5) target bundleno = 1 (0x1), region = 64 }

</bundles_post_ra>
